<compile_context>
chip_gen: v5e
topology: v5e:2x2
jax: 0.10.0
libtpu: 0.0.40
codegen_flags: <defaults>
</compile_context>

<pallas_src>
import functools

import numpy as np
import jax
import jax.numpy as jnp
from jax.experimental import pallas as pl
from jax.experimental.pallas import tpu as pltpu

_EPS = 1e-5        # PyTorch BatchNorm1d default eps
_NEG_BIG = -1e30   # finite "minus infinity" folded into padded fc3 bias columns


def _round_up(n, m):
    return ((n + m - 1) // m) * m


# --------------------------------------------------------------------------
# Kernel: one batch tile, all layers fused (GEMMs are tiny; MXU never binds).
# --------------------------------------------------------------------------
def hypertensor_kernel(x_ref, wht_ref, bht_ref, aht_ref, cht_ref,
                       w1_ref, b1_ref, w2_ref, b2_ref, w3_ref, b3_ref,
                       out_ref):
    x = x_ref[...]

    # HypertensorLayer: (linear + BN_in folded) -> a*tanh(z)^2 + c
    # (scale, 0.5^2, BN_out all folded) -> relu.  Dropout: identity (eval).
    z = jnp.dot(x, wht_ref[...], preferred_element_type=jnp.float32) + bht_ref[...]
    t = jnp.tanh(z)
    z = t * t * aht_ref[...] + cht_ref[...]
    z = jnp.maximum(z, 0.0)

    # fc1 (+bn1 folded) -> relu
    h = jnp.dot(z, w1_ref[...], preferred_element_type=jnp.float32) + b1_ref[...]
    h = jnp.maximum(h, 0.0)

    # fc2 (+bn2 folded) -> relu
    h = jnp.dot(h, w2_ref[...], preferred_element_type=jnp.float32) + b2_ref[...]
    h = jnp.maximum(h, 0.0)

    # fc3 padded to 128 lanes; padded columns carry a -1e30 bias so no
    # in-kernel class masking is needed.  log_softmax over the row.
    logits = jnp.dot(h, w3_ref[...], preferred_element_type=jnp.float32) + b3_ref[...]
    m = jnp.max(logits, axis=1, keepdims=True)
    s = logits - m
    lse = jnp.log(jnp.sum(jnp.exp(s), axis=1, keepdims=True))
    # TODO(synk): exp runs over all 128 padded lanes; a classes-on-sublanes
    # logsumexp layout would only matter if the v5e EUP ever binds (it doesn't
    # at these sizes).
    out_ref[...] = s - lse


# --------------------------------------------------------------------------
# Parameter construction (mirrors the module's shapes) and host-side folding.
# --------------------------------------------------------------------------
def init_params(key, in_dim, hidden, order=2, n_classes=10):
    fc1_size = hidden // (order - 1)
    keys = jax.random.split(key, 4)
    scale0 = 0.01 / (2 ** (order - 1))

    def bn_params(c):
        # rows = [gamma, beta, running_mean, running_var]
        return jnp.stack([jnp.ones((c,)), jnp.zeros((c,)),
                          jnp.zeros((c,)), jnp.ones((c,))]).astype(jnp.float32)

    def linear(k, fan_in, fan_out):
        w = jax.random.normal(k, (fan_in, fan_out), jnp.float32) / jnp.sqrt(float(fan_in))
        b = jnp.zeros((1, fan_out), jnp.float32)
        return w, b

    # Hypertensor weight (hidden, in_dim) * scale0, stored transposed (in_dim, hidden)
    w_ht = (jax.random.normal(keys[0], (hidden, in_dim), jnp.float32) * scale0).T
    b_ht = jnp.zeros((1, hidden), jnp.float32)
    scale = jnp.full((1, 1), scale0, jnp.float32)

    w1, b1 = linear(keys[1], hidden, fc1_size)
    w2, b2 = linear(keys[2], fc1_size, 64)
    w3, b3 = linear(keys[3], 64, n_classes)

    return dict(
        w_ht=w_ht, b_ht=b_ht, bn_in=bn_params(hidden), scale=scale,
        bn_out=bn_params(hidden),
        w1=w1, b1=b1, bn1=bn_params(fc1_size),
        w2=w2, b2=b2, bn2=bn_params(64),
        w3=w3, b3=b3,
    )


def fold_params(params, n_classes=10, out_pad=128):
    """Fold eval-mode BNs / scale / hyperop constant into weights (float64 math)."""
    f64 = lambda a: np.asarray(a, dtype=np.float64)

    def fold_bn(bn):
        g, b, m, v = (f64(bn[i]) for i in range(4))
        a = g / np.sqrt(v + _EPS)
        return a, b - m * a

    a_in, c_in = fold_bn(params["bn_in"])
    w_ht = f64(params["w_ht"]) * a_in[None, :]
    b_ht = f64(params["b_ht"]) * a_in[None, :] + c_in[None, :]

    a_out, c_out = fold_bn(params["bn_out"])
    scale = float(np.asarray(params["scale"]).reshape(()))
    a_ht = (0.25 * scale * scale) * a_out        # (scale*0.5)^2 * tanh^2, then BN_out
    c_ht = c_out

    a1, c1 = fold_bn(params["bn1"])
    w1 = f64(params["w1"]) * a1[None, :]
    b1 = f64(params["b1"]) * a1[None, :] + c1[None, :]

    a2, c2 = fold_bn(params["bn2"])
    w2 = f64(params["w2"]) * a2[None, :]
    b2 = f64(params["b2"]) * a2[None, :] + c2[None, :]

    # fc3 padded to a lane-dense 128 columns; padded columns get a -1e30 bias
    # (w3 padded columns are zero) so the kernel needs no class mask.
    w3 = f64(params["w3"])
    b3 = f64(params["b3"])
    w3p = np.zeros((w3.shape[0], out_pad), dtype=np.float64)
    w3p[:, :n_classes] = w3
    b3p = np.full((1, out_pad), _NEG_BIG, dtype=np.float64)
    b3p[:, :n_classes] = b3

    to = lambda a: jnp.asarray(a, dtype=jnp.float32)
    return dict(w_ht=to(w_ht), b_ht=to(b_ht),
                a_ht=to(a_ht[None, :]), c_ht=to(c_ht[None, :]),
                w1=to(w1), b1=to(b1), w2=to(w2), b2=to(b2),
                w3=to(w3p), b3=to(b3p))


# --------------------------------------------------------------------------
# Wrapper: batch tiling (ragged last block, no padding copy) + pallas_call.
# --------------------------------------------------------------------------
def _pick_batch_tile(B):
    # Aim for ~8 grid steps so prefetch/compute/writeback overlap and the v7x
    # megacore has work to shard; 8-row aligned; capped at 512 rows (safe under
    # v5e's 16 MiB default scoped VMEM, past ~85% of HBM roofline already).
    tb = _round_up(max(1, -(-B // 8)), 8)
    return max(8, min(512, tb))


@functools.partial(jax.jit, static_argnames=("n_classes",))
def hypertensor_forward(x, folded, n_classes=10):
    B = x.shape[0]
    x_flat = x.reshape(B, -1).astype(jnp.float32)   # x.view(x.size(0), -1)
    in_dim = x_flat.shape[1]                        # 256 here (128-multiple)
    out_pad = folded["w3"].shape[1]                 # 128 (lane-dense output)

    TB = _pick_batch_tile(B)
    grid = (pl.cdiv(B, TB),)                        # ragged last block, no jnp.pad

    weights = (folded["w_ht"], folded["b_ht"], folded["a_ht"], folded["c_ht"],
               folded["w1"], folded["b1"], folded["w2"], folded["b2"],
               folded["w3"], folded["b3"])

    def resident(a):
        # Tiny constant operand: whole array in VMEM, same block every step.
        # (pl.Buffered(1) would shave the pointless double buffer; ~150 KiB
        #  total so skipped for maximum portability.)
        return pl.BlockSpec(a.shape, lambda i: (0, 0))

    in_specs = ([pl.BlockSpec((TB, in_dim), lambda i: (i, 0))]
                + [resident(w) for w in weights])

    out_padded = pl.pallas_call(
        hypertensor_kernel,
        out_shape=jax.ShapeDtypeStruct((B, out_pad), jnp.float32),
        grid=grid,
        in_specs=in_specs,
        out_specs=pl.BlockSpec((TB, out_pad), lambda i: (i, 0)),
        compiler_params=pltpu.CompilerParams(
            dimension_semantics=("parallel",)),
    )(x_flat, *weights)

    # TODO(synk): bf16 input/output would halve HBM bytes but only pays off if
    # the data pipeline hands x over already narrow and downstream tolerates
    # bf16 log-probs; kept f32 to hold the 1e-3 reference tolerance.
    return out_padded[:, :n_classes]


# --------------------------------------------------------------------------
# Pure-JAX reference (unfused, original BN path) for correctness checking.
# --------------------------------------------------------------------------
def reference_forward(x, params):
    def bn(z, p):
        return (z - p[2:3]) * jax.lax.rsqrt(p[3:4] + _EPS) * p[0:1] + p[1:2]
    xf = x.reshape(x.shape[0], -1).astype(jnp.float32)
    z = xf @ params["w_ht"] + params["b_ht"]
    z = bn(z, params["bn_in"])
    z = jnp.tanh(z) * params["scale"]
    z = jnp.square(z * 0.5)                      # apply_hyperoperation(order=2)
    z = jnp.maximum(bn(z, params["bn_out"]), 0.0)
    h = jnp.maximum(bn(z @ params["w1"] + params["b1"], params["bn1"]), 0.0)
    h = jnp.maximum(bn(h @ params["w2"] + params["b2"], params["bn2"]), 0.0)
    logits = h @ params["w3"] + params["b3"]
    return jax.nn.log_softmax(logits, axis=1)


if __name__ == "__main__":
    # Small shapes consistent with the module: input_shape=(16,16), hidden=32,
    # hyperoperation_order=2 -> fc1_size=32, fc2=64, fc3=10.
    B, H, W = 2, 16, 16
    HIDDEN = 32
    key = jax.random.PRNGKey(0)
    kx, kp = jax.random.split(key)

    x = jax.random.normal(kx, (B, 1, H, W), jnp.float32)   # NCHW like MNIST (B,1,H,W)
    params = init_params(kp, in_dim=H * W, hidden=HIDDEN, order=2)
    folded = fold_params(params, n_classes=10, out_pad=128)

    out = hypertensor_forward(x, folded)
    out = jax.block_until_ready(out)

    ref = reference_forward(x, params)
    assert out.shape == (B, 10)
    assert bool(jnp.all(jnp.isfinite(out)))
    assert jnp.allclose(out, ref, atol=1e-3, rtol=1e-3)
    # TODO(synk): dropout / BatchNorm implemented in eval (inference) mode;
    # training-mode batch statistics and stochastic dropout are not modeled.
    print("KERNEL_OK")
</pallas_src>

<mosaic_0001>
module attributes {stable_mosaic.version = 11 : i64} {
  func.func @hypertensor_kernel(%arg0: i32, %arg1: memref<8x256xf32, #tpu.memory_space<vmem>>, %arg2: memref<256x32xf32, #tpu.memory_space<vmem>>, %arg3: memref<1x32xf32, #tpu.memory_space<vmem>>, %arg4: memref<1x32xf32, #tpu.memory_space<vmem>>, %arg5: memref<1x32xf32, #tpu.memory_space<vmem>>, %arg6: memref<32x32xf32, #tpu.memory_space<vmem>>, %arg7: memref<1x32xf32, #tpu.memory_space<vmem>>, %arg8: memref<32x64xf32, #tpu.memory_space<vmem>>, %arg9: memref<1x64xf32, #tpu.memory_space<vmem>>, %arg10: memref<64x128xf32, #tpu.memory_space<vmem>>, %arg11: memref<1x128xf32, #tpu.memory_space<vmem>>, %arg12: memref<8x128xf32, #tpu.memory_space<vmem>>) attributes {dimension_semantics = [#tpu.dimension_semantics<parallel>], iteration_bounds = array<i64: 1>, scalar_prefetch = 0 : i64, scratch_operands = 0 : i64, tpu.core_type = #tpu.core_type<tc>, window_params = [{transform_indices = @transform_0, window_bounds = array<i64: 8, 256>}, {pipeline_mode = #tpu.pipeline_mode<synchronous>, transform_indices = @transform_1, window_bounds = array<i64: 256, 32>}, {pipeline_mode = #tpu.pipeline_mode<synchronous>, transform_indices = @transform_2, window_bounds = array<i64: 1, 32>}, {pipeline_mode = #tpu.pipeline_mode<synchronous>, transform_indices = @transform_3, window_bounds = array<i64: 1, 32>}, {pipeline_mode = #tpu.pipeline_mode<synchronous>, transform_indices = @transform_4, window_bounds = array<i64: 1, 32>}, {pipeline_mode = #tpu.pipeline_mode<synchronous>, transform_indices = @transform_5, window_bounds = array<i64: 32, 32>}, {pipeline_mode = #tpu.pipeline_mode<synchronous>, transform_indices = @transform_6, window_bounds = array<i64: 1, 32>}, {pipeline_mode = #tpu.pipeline_mode<synchronous>, transform_indices = @transform_7, window_bounds = array<i64: 32, 64>}, {pipeline_mode = #tpu.pipeline_mode<synchronous>, transform_indices = @transform_8, window_bounds = array<i64: 1, 64>}, {pipeline_mode = #tpu.pipeline_mode<synchronous>, transform_indices = @transform_9, window_bounds = array<i64: 64, 128>}, {pipeline_mode = #tpu.pipeline_mode<synchronous>, transform_indices = @transform_10, window_bounds = array<i64: 1, 128>}, {transform_indices = @transform_11, window_bounds = array<i64: 8, 128>}]} {
    %c0 = arith.constant 0 : index
    %c0_0 = arith.constant 0 : index
    %0 = vector.load %arg1[%c0, %c0_0] : memref<8x256xf32, #tpu.memory_space<vmem>>, vector<8x256xf32>
    %c0_1 = arith.constant 0 : index
    %c0_2 = arith.constant 0 : index
    %1 = vector.load %arg2[%c0_1, %c0_2] : memref<256x32xf32, #tpu.memory_space<vmem>>, vector<256x32xf32>
    %cst = arith.constant dense<0.000000e+00> : vector<8x32xf32>
    %2 = tpu.matmul %0, %1, %cst {dimension_numbers = #tpu.dot_dimension_numbers<[1], [0], [0], [1], [0, 0, 1, 1], [], []>} : vector<8x256xf32>, vector<256x32xf32>, vector<8x32xf32> -> vector<8x32xf32>
    %c0_3 = arith.constant 0 : index
    %c0_4 = arith.constant 0 : index
    %3 = vector.load %arg3[%c0_3, %c0_4] : memref<1x32xf32, #tpu.memory_space<vmem>>, vector<1x32xf32>
    %4 = vector.broadcast %3 : vector<1x32xf32> to vector<8x32xf32>
    %5 = arith.addf %2, %4 : vector<8x32xf32>
    %6 = math.tanh %5 : vector<8x32xf32>
    %7 = arith.mulf %6, %6 : vector<8x32xf32>
    %c0_5 = arith.constant 0 : index
    %c0_6 = arith.constant 0 : index
    %8 = vector.load %arg4[%c0_5, %c0_6] : memref<1x32xf32, #tpu.memory_space<vmem>>, vector<1x32xf32>
    %9 = vector.broadcast %8 : vector<1x32xf32> to vector<8x32xf32>
    %10 = arith.mulf %7, %9 : vector<8x32xf32>
    %c0_7 = arith.constant 0 : index
    %c0_8 = arith.constant 0 : index
    %11 = vector.load %arg5[%c0_7, %c0_8] : memref<1x32xf32, #tpu.memory_space<vmem>>, vector<1x32xf32>
    %12 = vector.broadcast %11 : vector<1x32xf32> to vector<8x32xf32>
    %13 = arith.addf %10, %12 : vector<8x32xf32>
    %cst_9 = arith.constant 0.000000e+00 : f32
    %14 = vector.broadcast %cst_9 : f32 to vector<8x32xf32>
    %15 = arith.maximumf %13, %14 : vector<8x32xf32>
    %c0_10 = arith.constant 0 : index
    %c0_11 = arith.constant 0 : index
    %16 = vector.load %arg6[%c0_10, %c0_11] : memref<32x32xf32, #tpu.memory_space<vmem>>, vector<32x32xf32>
    %cst_12 = arith.constant dense<0.000000e+00> : vector<8x32xf32>
    %17 = tpu.matmul %15, %16, %cst_12 {dimension_numbers = #tpu.dot_dimension_numbers<[1], [0], [0], [1], [0, 0, 1, 1], [], []>} : vector<8x32xf32>, vector<32x32xf32>, vector<8x32xf32> -> vector<8x32xf32>
    %c0_13 = arith.constant 0 : index
    %c0_14 = arith.constant 0 : index
    %18 = vector.load %arg7[%c0_13, %c0_14] : memref<1x32xf32, #tpu.memory_space<vmem>>, vector<1x32xf32>
    %19 = vector.broadcast %18 : vector<1x32xf32> to vector<8x32xf32>
    %20 = arith.addf %17, %19 : vector<8x32xf32>
    %cst_15 = arith.constant 0.000000e+00 : f32
    %21 = vector.broadcast %cst_15 : f32 to vector<8x32xf32>
    %22 = arith.maximumf %20, %21 : vector<8x32xf32>
    %c0_16 = arith.constant 0 : index
    %c0_17 = arith.constant 0 : index
    %23 = vector.load %arg8[%c0_16, %c0_17] : memref<32x64xf32, #tpu.memory_space<vmem>>, vector<32x64xf32>
    %cst_18 = arith.constant dense<0.000000e+00> : vector<8x64xf32>
    %24 = tpu.matmul %22, %23, %cst_18 {dimension_numbers = #tpu.dot_dimension_numbers<[1], [0], [0], [1], [0, 0, 1, 1], [], []>} : vector<8x32xf32>, vector<32x64xf32>, vector<8x64xf32> -> vector<8x64xf32>
    %c0_19 = arith.constant 0 : index
    %c0_20 = arith.constant 0 : index
    %25 = vector.load %arg9[%c0_19, %c0_20] : memref<1x64xf32, #tpu.memory_space<vmem>>, vector<1x64xf32>
    %26 = vector.broadcast %25 : vector<1x64xf32> to vector<8x64xf32>
    %27 = arith.addf %24, %26 : vector<8x64xf32>
    %cst_21 = arith.constant 0.000000e+00 : f32
    %28 = vector.broadcast %cst_21 : f32 to vector<8x64xf32>
    %29 = arith.maximumf %27, %28 : vector<8x64xf32>
    %c0_22 = arith.constant 0 : index
    %c0_23 = arith.constant 0 : index
    %30 = vector.load %arg10[%c0_22, %c0_23] : memref<64x128xf32, #tpu.memory_space<vmem>>, vector<64x128xf32>
    %cst_24 = arith.constant dense<0.000000e+00> : vector<8x128xf32>
    %31 = tpu.matmul %29, %30, %cst_24 {dimension_numbers = #tpu.dot_dimension_numbers<[1], [0], [0], [1], [0, 0, 1, 1], [], []>} : vector<8x64xf32>, vector<64x128xf32>, vector<8x128xf32> -> vector<8x128xf32>
    %c0_25 = arith.constant 0 : index
    %c0_26 = arith.constant 0 : index
    %32 = vector.load %arg11[%c0_25, %c0_26] : memref<1x128xf32, #tpu.memory_space<vmem>>, vector<1x128xf32>
    %33 = vector.broadcast %32 : vector<1x128xf32> to vector<8x128xf32>
    %34 = arith.addf %31, %33 : vector<8x128xf32>
    %cst_27 = arith.constant dense<0xFF800000> : vector<8xf32>
    %35 = vector.multi_reduction <maximumf>, %34, %cst_27 [1] : vector<8x128xf32> to vector<8xf32>
    %36 = vector.shape_cast %35 : vector<8xf32> to vector<8x1xf32>
    %37 = vector.broadcast %36 : vector<8x1xf32> to vector<8x128xf32>
    %38 = arith.subf %34, %37 : vector<8x128xf32>
    %39 = math.exp %38 : vector<8x128xf32>
    %cst_28 = arith.constant dense<0.000000e+00> : vector<8xf32>
    %40 = vector.multi_reduction <add>, %39, %cst_28 [1] : vector<8x128xf32> to vector<8xf32>
    %41 = vector.shape_cast %40 : vector<8xf32> to vector<8x1xf32>
    %42 = math.log %41 : vector<8x1xf32>
    %43 = vector.broadcast %42 : vector<8x1xf32> to vector<8x128xf32>
    %44 = arith.subf %38, %43 : vector<8x128xf32>
    %c0_29 = arith.constant 0 : index
    %c0_30 = arith.constant 0 : index
    %45 = vector.load %arg12[%c0_29, %c0_30] : memref<8x128xf32, #tpu.memory_space<vmem>>, vector<8x128xf32>
    tpu.vector_store %arg12[%c0_29, %c0_30], %44 {strides = array<i32>} : memref<8x128xf32, #tpu.memory_space<vmem>>, vector<8x128xf32>,
    return
  }
  func.func @transform_0(%arg0: i32) -> (i32, i32) {
    %c0_i32 = arith.constant 0 : i32
    %c0_i32_0 = arith.constant 0 : i32
    return %arg0, %c0_i32 : i32, i32
  }
  func.func @transform_1(%arg0: i32) -> (i32, i32) {
    %c0_i32 = arith.constant 0 : i32
    %c0_i32_0 = arith.constant 0 : i32
    %c0_i32_1 = arith.constant 0 : i32
    return %c0_i32, %c0_i32_0 : i32, i32
  }
  func.func @transform_2(%arg0: i32) -> (i32, i32) {
    %c0_i32 = arith.constant 0 : i32
    %c0_i32_0 = arith.constant 0 : i32
    %c0_i32_1 = arith.constant 0 : i32
    return %c0_i32, %c0_i32_0 : i32, i32
  }
  func.func @transform_3(%arg0: i32) -> (i32, i32) {
    %c0_i32 = arith.constant 0 : i32
    %c0_i32_0 = arith.constant 0 : i32
    %c0_i32_1 = arith.constant 0 : i32
    return %c0_i32, %c0_i32_0 : i32, i32
  }
  func.func @transform_4(%arg0: i32) -> (i32, i32) {
    %c0_i32 = arith.constant 0 : i32
    %c0_i32_0 = arith.constant 0 : i32
    %c0_i32_1 = arith.constant 0 : i32
    return %c0_i32, %c0_i32_0 : i32, i32
  }
  func.func @transform_5(%arg0: i32) -> (i32, i32) {
    %c0_i32 = arith.constant 0 : i32
    %c0_i32_0 = arith.constant 0 : i32
    %c0_i32_1 = arith.constant 0 : i32
    return %c0_i32, %c0_i32_0 : i32, i32
  }
  func.func @transform_6(%arg0: i32) -> (i32, i32) {
    %c0_i32 = arith.constant 0 : i32
    %c0_i32_0 = arith.constant 0 : i32
    %c0_i32_1 = arith.constant 0 : i32
    return %c0_i32, %c0_i32_0 : i32, i32
  }
  func.func @transform_7(%arg0: i32) -> (i32, i32) {
    %c0_i32 = arith.constant 0 : i32
    %c0_i32_0 = arith.constant 0 : i32
    %c0_i32_1 = arith.constant 0 : i32
    return %c0_i32, %c0_i32_0 : i32, i32
  }
  func.func @transform_8(%arg0: i32) -> (i32, i32) {
    %c0_i32 = arith.constant 0 : i32
    %c0_i32_0 = arith.constant 0 : i32
    %c0_i32_1 = arith.constant 0 : i32
    return %c0_i32, %c0_i32_0 : i32, i32
  }
  func.func @transform_9(%arg0: i32) -> (i32, i32) {
    %c0_i32 = arith.constant 0 : i32
    %c0_i32_0 = arith.constant 0 : i32
    %c0_i32_1 = arith.constant 0 : i32
    return %c0_i32, %c0_i32_0 : i32, i32
  }
  func.func @transform_10(%arg0: i32) -> (i32, i32) {
    %c0_i32 = arith.constant 0 : i32
    %c0_i32_0 = arith.constant 0 : i32
    %c0_i32_1 = arith.constant 0 : i32
    return %c0_i32, %c0_i32_0 : i32, i32
  }
  func.func @transform_11(%arg0: i32) -> (i32, i32) {
    %c0_i32 = arith.constant 0 : i32
    %c0_i32_0 = arith.constant 0 : i32
    return %arg0, %c0_i32 : i32, i32
  }
}

</mosaic_0001>

<bundles_post_ra>
// kernel: hypertensor_forward.1
= control target key start
LH: loop header
LB: loop body
LE: loop exit
PB: predicated region body
PF: predicated region fallthrough
CT: control target
= control target key end

     0   :  { %16 = vsyncpa [#allocation3], 0  ;;  %vm155_vm0 = vcmask 261120   ;;  %vm224_vm1 = vcmask 523264   ;;  %s563_s0 = inlined_call_operand.vmem [shape: f32[2,256], index: 0, kind: input, shape index: {}]   ;;  %s564_s1 = inlined_call_operand.vmem [shape: f32[256,32], index: 1, kind: input, shape index: {}]   ;;  %s565_s2 = inlined_call_operand.vmem [shape: f32[1,32], index: 2, kind: input, shape index: {}]   ;;  %s566_s3 = inlined_call_operand.vmem [shape: f32[1,32], index: 3, kind: input, shape index: {}]   ;;  %s567_s4 = inlined_call_operand.vmem [shape: f32[1,32], index: 4, kind: input, shape index: {}]   ;;  %s568_s5 = inlined_call_operand.vmem [shape: f32[32,32], index: 5, kind: input, shape index: {}]   ;;  %s569_s6 = inlined_call_operand.vmem [shape: f32[1,32], index: 6, kind: input, shape index: {}]   ;;  %s570_s7 = inlined_call_operand.vmem [shape: f32[32,64], index: 7, kind: input, shape index: {}]   ;;  %s571_s8 = inlined_call_operand.vmem [shape: f32[1,64], index: 8, kind: input, shape index: {}]   ;;  %s572_s9 = inlined_call_operand.vmem [shape: f32[64,128], index: 9, kind: input, shape index: {}]   ;;  %s573_s10 = inlined_call_operand.vmem [shape: f32[1,128], index: 10, kind: input, shape index: {}]   ;;  %s574_s11 = inlined_call_operand.hbm [shape: f32[2,128], index: 11, kind: output, shape index: {}]  }
   0x1   :  { %v58_v0 = vld [vmem:[%s564_s1 + $0x78] sm:$0xff]  ;;  %v57_v1 = vld [vmem:[%s564_s1 + $0x70] sm:$0xff]  ;;  %v56_v4 = vld [vmem:[%s564_s1 + $0x68] sm:$0xff] }
   0x2   :  { %94 = vmatpush.msra.mxu0 %v58_v0  ;;  %v74_v2 = vld [vmem:[%s564_s1 + $0xf8] sm:$0xff]  ;;  %v73_v3 = vld [vmem:[%s564_s1 + $0xf0] sm:$0xff]  ;;  %v72_v5 = vld [vmem:[%s564_s1 + $0xe8] sm:$0xff] }
   0x3   :  { %114 = vmatpush.msra.mxu1 %v74_v2  ;;  %v55_v6 = vld [vmem:[%s564_s1 + $0x60] sm:$0xff]  ;;  %v54_v8 = vld [vmem:[%s564_s1 + $0x58] sm:$0xff]  ;;  %v53_v10 = vld [vmem:[%s564_s1 + $0x50] sm:$0xff] }
   0x4   :  { %95 = vmatpush.msra.mxu0 %v57_v1  ;;  %v71_v7 = vld [vmem:[%s564_s1 + $0xe0] sm:$0xff]  ;;  %v70_v9 = vld [vmem:[%s564_s1 + $0xd8] sm:$0xff]  ;;  %v69_v11 = vld [vmem:[%s564_s1 + $0xd0] sm:$0xff] }
   0x5   :  { %115 = vmatpush.msra.mxu1 %v73_v3  ;;  %v52_v12 = vld [vmem:[%s564_s1 + $0x48] sm:$0xff]  ;;  %v51_v13 = vld [vmem:[%s564_s1 + $0x40] sm:$0xff]  ;;  %v50_v18 = vld [vmem:[%s564_s1 + $0x38] sm:$0xff] }
   0x6   :  { %96 = vmatpush.msra.mxu0 %v56_v4  ;;  %v39_v14 = vld [vmem:[%s563_s0] sm:$0xf]  ;;  %v68_v15 = vld [vmem:[%s564_s1 + $0xc8] sm:$0xff]  ;;  %v40_v16 = vld [vmem:[%s563_s0 + $0x4] sm:$0xf] }
   0x7   :  { %116 = vmatpush.msra.mxu1 %v72_v5  ;;  %v41_v17 = vld [vmem:[%s563_s0 + $0x8] sm:$0xf]  ;;  %v42_v19 = vld [vmem:[%s563_s0 + $0xc] sm:$0xf]  ;;  %83 = vst [vmem:[#allocation1] ss:$4 sm:$0xff] %v39_v14 }
   0x8   :  { %97 = vmatpush.msra.mxu0 %v55_v6  ;;  %v67_v20 = vld [vmem:[%s564_s1 + $0xc0] sm:$0xff]  ;;  %v66_v21 = vld [vmem:[%s564_s1 + $0xb8] sm:$0xff]  ;;  %85 = vst [vmem:[#allocation1 + $0x1] ss:$4 sm:$0xff] %v40_v16  ;;  %v49_v22 = vld [vmem:[%s564_s1 + $0x30] sm:$0xff] }
   0x9   :  { %117 = vmatpush.msra.mxu1 %v71_v7  ;;  %87 = vst [vmem:[#allocation1 + $0x2] ss:$4 sm:$0xff] %v41_v17  ;;  %v65_v23 = vld [vmem:[%s564_s1 + $0xb0] sm:$0xff]  ;;  %v48_v24 = vld [vmem:[%s564_s1 + $0x28] sm:$0xff]  ;;  %v47_v26 = vld [vmem:[%s564_s1 + $0x20] sm:$0xff] }
   0xa   :  { %98 = vmatpush.msra.mxu0 %v54_v8  ;;  %89 = vst [vmem:[#allocation1 + $0x3] ss:$4 sm:$0xff] %v42_v19  ;;  %v64_v25 = vld [vmem:[%s564_s1 + $0xa8] sm:$0xff]  ;;  %v63_v27 = vld [vmem:[%s564_s1 + $0xa0] sm:$0xff]  ;;  %v46_v28 = vld [vmem:[%s564_s1 + $0x18] sm:$0xff] }
   0xb   :  { %118 = vmatpush.msra.mxu1 %v70_v9  ;;  %v62_v29 = vld [vmem:[%s564_s1 + $0x98] sm:$0xff]  ;;  %v45_v30 = vld [vmem:[%s564_s1 + $0x10] sm:$0xff]  ;;  %v44_v32 = vld [vmem:[%s564_s1 + $0x8] sm:$0xff] }
   0xc   :  { %99 = vmatpush.msra.mxu0 %v53_v10  ;;  %v61_v31 = vld [vmem:[%s564_s1 + $0x90] sm:$0xff]  ;;  %v60_v33 = vld [vmem:[%s564_s1 + $0x88] sm:$0xff]  ;;  %v43_v34 = vld [vmem:[%s564_s1] sm:$0xff] }
   0xd   :  { %119 = vmatpush.msra.mxu1 %v69_v11  ;;  %v59_v36 = vld [vmem:[%s564_s1 + $0x80] sm:$0xff]  ;;  %v150_v38 = vld [vmem:[%s568_s5 + $0x18] sm:$0xff]  ;;  %v149_v39 = vld [vmem:[%s568_s5 + $0x10] sm:$0xff] }
   0xe   :  { %100 = vmatpush.msra.mxu0 %v52_v12  ;;  %171 = vmatpush.msra.mxu2 %v150_v38  ;;  %v148_v40 = vld [vmem:[%s568_s5 + $0x8] sm:$0xff]  ;;  %v147_v41 = vld [vmem:[%s568_s5] sm:$0xff]  ;;  %v183_v42 = vld [vmem:[%s570_s7 + $0x18] sm:$0xff] }
   0xf   :  { %120 = vmatpush.msra.mxu1 %v68_v15  ;;  %203 = vmatpush.msra.mxu3 %v183_v42  ;;  %v283_v43 = vld [vmem:[%s565_s2] ss:$0 sm:$0xff]  ;;  %v182_v55 = vld [vmem:[%s570_s7 + $0x10] sm:$0xff]  ;;  %v181_v56 = vld [vmem:[%s570_s7 + $0x8] sm:$0xff] }
  0x10   :  { %101 = vmatpush.msra.mxu0 %v51_v13  ;;  %172 = vmatpush.msra.mxu2 %v149_v39  ;;  %v284_v48 = vld [vmem:[%s566_s3] ss:$0 sm:$0xff]  ;;  %v219_v58 = vld [vmem:[%s572_s9 + $0x38] sm:$0xff]  ;;  %v218_v59 = vld [vmem:[%s572_s9 + $0x30] sm:$0xff] }
  0x11   :  { %121 = vmatpush.msra.mxu1 %v67_v20  ;;  %v90_v35 = vld.sshfl [vmem:[#allocation1] sm:$0xff pattern:$0x73625140]  ;;  %v91_v37 = vld.sshfl [vmem:[#allocation1 + $0x8] sm:$0xff pattern:$0x73625140]  ;;  %204 = vmatpush.msra.mxu3 %v182_v55 }
  0x12   :  { %102 = vmatpush.msra.mxu0 %v50_v18  ;;  %173 = vmatpush.msra.mxu2 %v148_v40  ;;  %v285_v51 = vld [vmem:[%s567_s4] ss:$0 sm:$0xff]  ;;  %v217_v60 = vld [vmem:[%s572_s9 + $0x28] sm:$0xff]  ;;  %v215_v62 = vld [vmem:[%s572_s9 + $0x18] sm:$0xff] }
  0x13   :  { %122 = vmatpush.msra.mxu1 %v66_v21  ;;  %205 = vmatpush.msra.mxu3 %v181_v56  ;;  %v180_v57 = vld [vmem:[%s570_s7] sm:$0xff]  ;;  %v214_v3 = vld [vmem:[%s572_s9 + $0x10] sm:$0xff]  ;;  %v213_v4 = vld [vmem:[%s572_s9 + $0x8] sm:$0xff] }
  0x14   :  { %103 = vmatpush.msra.mxu0 %v49_v22  ;;  %174 = vmatpush.msra.mxu2 %v147_v41  ;;  %v216_v61 = vld [vmem:[%s572_s9 + $0x20] sm:$0xff] }
  0x15   :  { %123 = vmatpush.msra.mxu1 %v65_v23  ;;  %206 = vmatpush.msra.mxu3 %v180_v57  ;;  %v286_v63 = vld [vmem:[%s569_s6] ss:$0 sm:$0xff] }
  0x16   :  { %104 = vmatpush.msra.mxu0 %v48_v24  ;;  %236 = vmatpush.msrb.mxu2 %v219_v58  ;;  %v212_v5 = vld [vmem:[%s572_s9] sm:$0xff] }
  0x17   :  { %124 = vmatpush.msra.mxu1 %v64_v25  ;;  %v287_v6 = vld [vmem:[%s571_s8] ss:$0 sm:$0xff] }
  0x18   :  { %105 = vmatpush.msra.mxu0 %v47_v26  ;;  %237 = vmatpush.msrb.mxu2 %v218_v59  ;;  %v288_v10 = vld [vmem:[%s573_s10] ss:$0 sm:$0xff] }
  0x19   :  { %125 = vmatpush.msra.mxu1 %v63_v27 }
  0x1a   :  { %106 = vmatpush.msra.mxu0 %v46_v28  ;;  %238 = vmatpush.msrb.mxu2 %v217_v60 }
  0x1b   :  { %126 = vmatpush.msra.mxu1 %v62_v29 }
  0x1c   :  { %107 = vmatpush.msra.mxu0 %v45_v30  ;;  %239 = vmatpush.msrb.mxu2 %v216_v61 }
  0x1d   :  { %127 = vmatpush.msra.mxu1 %v61_v31 }
  0x1e   :  { %108 = vmatpush.msra.mxu0 %v44_v32  ;;  %240 = vmatpush.msrb.mxu2 %v215_v62 }
  0x1f   :  { %128 = vmatpush.msra.mxu1 %v60_v33 }
  0x20   :  { %109 = vmatpush.msra.mxu0 %v43_v34  ;;  %241 = vmatpush.msrb.mxu2 %v214_v3 }
  0x21   :  { %110 = vmatmul.f32.vlgmr.msra.gmra.mxu0 %v90_v35  ;;  %129 = vmatpush.msra.mxu1 %v59_v36 }
  0x22   :  { %130 = vmatmul.f32.vlgmr.msra.gmra.mxu1 %v91_v37  ;;  %242 = vmatpush.msrb.mxu2 %v213_v4 }
  0x24   :  { %243 = vmatpush.msrb.mxu2 %v212_v5 }
  0x9e   :  { %v111_v44 = vpop.f32.mrf.mxu0 }
  0x9f   :  { %v112_v45 = vadd.f32 %v283_v43, %v111_v44  ;;  %v131_v46 = vpop.f32.mrf.mxu1 }
  0xa1   :  { %v132_v47 = vadd.f32 %v131_v46, %v112_v45 }
  0xa3   :  { %289 = vtanh.f32 %v132_v47 }
  0xa9   :  { %v290_v49 = vpop.eup %289 }
  0xaa   :  { %v135_v50 = vmul.f32 %v290_v49, %v290_v49 }
  0xac   :  { %v140_v52 = vmul.f32 %v284_v48, %v135_v50 }
  0xae   :  { %v145_v53 = vadd.f32 %v285_v51, %v140_v52 }
  0xb0   :  { %v146_v54 = vmax.f32 %v145_v53, 0.0 }
  0xb2   :  { %277 = vmatmul.msk.f32.vlgmr.msra.gmra.mxu2 %vm155_vm0, %v146_v54 }
 0x135   :  { %v176_v0 = vpop.f32.mrf.mxu2 }
 0x136   :  { %v177_v1 = vadd.f32 %v286_v63, %v176_v0 }
 0x138   :  { %v179_v2 = vmax.f32 %v177_v1, 0.0 }
 0x13a   :  { %278 = vmatmul.msk.f32.vlgmr.msra.gmra.mxu3 %vm155_vm0, %v179_v2 }
 0x1bd   :  { %v208_v7 = vpop.f32.mrf.mxu3 }
 0x1be   :  { %v209_v8 = vadd.f32 %v287_v6, %v208_v7 }
 0x1c0   :  { %v211_v9 = vmax.f32 %v209_v8, 0.0 }
 0x1c2   :  { %279 = vmatmul.msk.f32.vlgmr.msrb.gmra.mxu2 %vm224_vm1, %v211_v9 }
 0x245   :  { %v245_v11 = vpop.f32.mrf.mxu2 }
 0x246   :  { %v246_v12 = vadd.f32 %v288_v10, %v245_v11 }
 0x248   :  { %248 = vmax.xlane.f32.xlu0 %v246_v12 }
 0x2bb   :  { %v249_v13 = vpop.xlane.xlu0 %248 }
 0x2bc   :  { %v250_v14 = vsub.f32 %v246_v12, %v249_v13 }
 0x2be   :  { %v251_v15 = vmul.f32 1.442695, %v250_v14 }
 0x2c0   :  { %291 = vpow2.f32 %v251_v15 }
 0x2c6   :  { %v292_v16 = vpop.eup %291 }
 0x2c7   :  { %253 = vadd.xlane.f32.xlu0 %v292_v16 }
 0x33a   :  { %v254_v17 = vpop.xlane.xlu0 %253 }
 0x33b   :  { %293 = vlog2.f32 %v254_v17 }
 0x341   :  { %v294_v18 = vpop.eup %293 }
 0x342   :  { %v256_v19 = vmul.f32 0.6931472, %v294_v18 }
 0x344   :  { %v257_v20 = vsub.f32 %v250_v14, %v256_v19 }
 0x346   :  { %258 = vst [vmem:[#allocation2] sm:$0xff] %v257_v20 }
 0x347   :  { %262 = vsyncadd [#allocation3], 96  ;;  %s265_s10 = sshll.u32 %s574_s11, 4  ;;  %s321_s0 = smov [#allocation2]   ;;  %s266_s10 = int_to_ptr.hbm [resolvable:$true] %s265_s10 }
 0x348   :  { %s263_s25 = sshll.u32 %s321_s0, 4  ;;  %s322_s26 = smov 32   ;;  %s264_s25 = int_to_ptr.vmem [resolvable:$true] %s263_s25 }
 0x349   :  { %s323_s3 = smov 2  }
 0x34a   :  { %271 = dma.vmem_to_hbm [thread:$0]  %s264_s25, 32, %s266_s10, [#allocation3], %s322_s26, %s322_s26, %s323_s3  }
 0x34b   :  { %319 = dma.done.wait [#allocation3], 128  }
 0x34c   :  { %320 = vsyncadd [#allocation3], 4294967168 }
 0x34d   :  { %276 = vsyncpa [#allocation3], 1 }

</bundles_post_ra>
